<compile_context>
chip_gen: v6e
topology: v6e:2x2x1
jax: 0.10.0
libtpu: 0.0.40
codegen_flags: <defaults>
</compile_context>

<pallas_src>
from functools import partial

import jax
import jax.numpy as jnp
from jax.experimental import pallas as pl
from jax.experimental.pallas import tpu as pltpu


def _round_up(x, m):
    return (x + m - 1) // m * m


def _device_kind():
    try:
        return jax.devices()[0].device_kind.lower()
    except Exception:
        return ""


def _default_num_tiles():
    # v7x has 2 TensorCores per chip -> 2 parallel tiles (one per TC).
    # v5e / v6e have a single TC, so one grid step minimizes the ~0.35 us
    # per-step pipeline overhead (the working set is << VMEM anyway).
    return 2 if "v7" in _device_kind() else 1


def _default_matmul_dtype():
    # v5e's VPU/EUP has no bf16: f32<->bf16 casts are extra VALU packing work on
    # the slot that actually saturates, and the 32x32 MXU matmuls are nowhere
    # near MXU-bound, so run pure f32 there. bf16 elsewhere.
    kind = _device_kind()
    if "v5e" in kind or "v5 lite" in kind or "v5lite" in kind:
        return jnp.float32
    return jnp.bfloat16


def mlp_kernel(x_ref, hw_ref, small_ref, o_ref, *, use_bf16):
    """Whole forward pass on one (features, batch_tile) tile.

    x_ref     : (1, bt)          f32   (input, transposed: batch on lanes)
    hw_ref    : (4, nH, nH)      bf16 or f32   hidden weights W2..W5 (PyTorch (out,in))
    small_ref : (nH, 8)          f32   columns = [w1, b1, b2, b3, b4, b5, w6^T, b6]
    o_ref     : (1, bt)          f32
    """
    x = x_ref[...]                                   # (1, bt) f32
    small = small_ref[...]                           # (nH, 8) f32, single load
    w1 = small[:, 0:1]
    b1 = small[:, 1:2]
    hidden_biases = (small[:, 2:3], small[:, 3:4], small[:, 4:5], small[:, 5:6])
    w6 = small[:, 6:7]
    b6 = small[0:1, 7:8]

    # Layer 1 (nIn == 1): outer product -> pure VPU, no MXU round-trip.
    h = jnp.maximum(w1 * x + b1, 0.0)                # (nH, bt) f32

    # Layers 2..5: (nH, nH) @ (nH, bt) on the MXU with f32 accumulation.
    if use_bf16:
        # Keep activations / bias-add / ReLU in bf16 (halves VALU vreg traffic
        # on v6e/v7x); the dot still accumulates in f32.
        h = h.astype(jnp.bfloat16)
        for layer in range(4):
            z = jnp.dot(hw_ref[layer], h, preferred_element_type=jnp.float32)
            h = jnp.maximum(z.astype(jnp.bfloat16)
                            + hidden_biases[layer].astype(jnp.bfloat16), 0)
        h = h.astype(jnp.float32)
    else:
        # Pure-f32 path (v5e): no casts at all.
        for layer in range(4):
            z = jnp.dot(hw_ref[layer], h, preferred_element_type=jnp.float32)
            h = jnp.maximum(z + hidden_biases[layer], 0.0)

    # Layer 6 (nOut == 1): 32-wide reduction = VPU multiply + sublane sum,
    # written into the lane-dense (1, bt) output block.
    out = jnp.sum(w6 * h, axis=0, keepdims=True) + b6
    o_ref[...] = out.astype(o_ref.dtype)


def mlp_forward(x, params, *, batch_tile=None, matmul_dtype=None):
    """x: (B, nInput) f32.  params: [(W1,b1),...,(W6,b6)] in PyTorch layout
    (W: (out, in), b: (out,)).  Returns (B, nOutput) f32."""
    B, nIn = x.shape
    nH = params[0][0].shape[0]
    nOut = params[-1][0].shape[0]
    assert nIn == 1 and nOut == 1, "kernel specialized for scalar regression (nInput=nOutput=1)"
    assert len(params) == 6

    if matmul_dtype is None:
        matmul_dtype = _default_matmul_dtype()
    use_bf16 = matmul_dtype == jnp.bfloat16

    if batch_tile is None:
        num_tiles = _default_num_tiles()             # 2 on v7x, 1 on v5e/v6e
        batch_tile = max(128, min(8192, _round_up(pl.cdiv(B, num_tiles), 128)))
    assert batch_tile % 128 == 0, "batch_tile must be lane-aligned (multiple of 128)"

    # Layout plumbing: present x as (nIn, B_pad) and the output as (nOut, B_pad).
    B_pad = _round_up(B, batch_tile)
    x_t = x.astype(jnp.float32).T                    # (1, B)
    if B_pad != B:
        x_t = jnp.pad(x_t, ((0, 0), (0, B_pad - B)))

    # ---- Pack 12 weight/bias operands into 2 arrays (2 DMAs instead of 12). ----
    (w1, b1), (w2, b2), (w3, b3), (w4, b4), (w5, b5), (w6, b6) = params
    hidden_w = jnp.stack(
        [jnp.asarray(w2), jnp.asarray(w3), jnp.asarray(w4), jnp.asarray(w5)], axis=0
    ).astype(matmul_dtype)                           # (4, nH, nH)

    def _col(v):
        return jnp.asarray(v, jnp.float32).reshape(nH)

    b6_col = jnp.broadcast_to(jnp.asarray(b6, jnp.float32).reshape(()), (nH,))
    small = jnp.stack(
        [_col(w1), _col(b1), _col(b2), _col(b3), _col(b4), _col(b5), _col(w6), b6_col],
        axis=1,
    )                                                # (nH, 8) f32

    grid = (B_pad // batch_tile,)
    in_specs = [
        pl.BlockSpec((nIn, batch_tile), lambda i: (0, i)),      # x tile (lane-dense)
        pl.BlockSpec(hidden_w.shape, lambda i: (0, 0, 0)),      # resident weights
        pl.BlockSpec(small.shape, lambda i: (0, 0)),            # resident small block
    ]
    out_spec = pl.BlockSpec((nOut, batch_tile), lambda i: (0, i))

    out_t = pl.pallas_call(
        partial(mlp_kernel, use_bf16=use_bf16),
        out_shape=jax.ShapeDtypeStruct((nOut, B_pad), jnp.float32),
        grid_spec=pltpu.PrefetchScalarGridSpec(
            num_scalar_prefetch=0,
            grid=grid,
            in_specs=in_specs,
            out_specs=out_spec,
        ),
        compiler_params=pltpu.CompilerParams(
            dimension_semantics=("parallel",)),
    )(x_t, hidden_w, small)

    return out_t[:, :B].T                            # (B, nOut)


def init_params(key, nInput, nHidden, nOutput, dtype=jnp.float32):
    """PyTorch nn.Linear default init: U(-1/sqrt(fan_in), 1/sqrt(fan_in)); W: (out, in)."""
    sizes = [(nHidden, nInput)] + [(nHidden, nHidden)] * 4 + [(nOutput, nHidden)]
    params = []
    for (fan_out, fan_in) in sizes:
        key, kw, kb = jax.random.split(key, 3)
        bound = 1.0 / (fan_in ** 0.5)
        w = jax.random.uniform(kw, (fan_out, fan_in), dtype, minval=-bound, maxval=bound)
        b = jax.random.uniform(kb, (fan_out,), dtype, minval=-bound, maxval=bound)
        params.append((w, b))
    return params


def reference_forward(x, params, matmul_dtype=jnp.bfloat16):
    """Pure-JAX reference in standard (batch, features) layout, PyTorch semantics
    y = x @ W.T + b, mirroring the kernel's dtype path (bf16 operands + bf16
    bias/ReLU on hidden layers, f32 accumulation, f32 first/last layers)."""
    use_bf16 = matmul_dtype == jnp.bfloat16
    h = x.astype(jnp.float32)
    n = len(params)
    for idx, (w, b) in enumerate(params):
        w = jnp.asarray(w)
        b = jnp.asarray(b, jnp.float32).reshape(1, -1)
        first, last = idx == 0, idx == n - 1
        if first or last:
            z = h.astype(jnp.float32) @ w.astype(jnp.float32).T + b
            h = z if last else jnp.maximum(z, 0.0)
        elif use_bf16:
            z = jnp.dot(h.astype(jnp.bfloat16), w.astype(jnp.bfloat16).T,
                        preferred_element_type=jnp.float32)
            h = jnp.maximum(z.astype(jnp.bfloat16) + b.astype(jnp.bfloat16), 0)
        else:
            z = h @ w.astype(jnp.float32).T + b
            h = jnp.maximum(z, 0.0)
    return h


if __name__ == "__main__":
    nInput, nHidden, nOutput = 1, 32, 1
    batch = 1000  # mirrors x = np.linspace(0, 1, 1000) in the original script

    key = jax.random.PRNGKey(0)
    key, kx = jax.random.split(key)
    x = jax.random.uniform(kx, (batch, nInput), jnp.float32)     # scalars in [0, 1)

    params = init_params(key, nInput, nHidden, nOutput)

    # Chip-dependent defaults: 1 grid step on v5e/v6e, 2 parallel steps on v7x;
    # f32 matmul/activation path on v5e, bf16 elsewhere.
    out = mlp_forward(x, params)
    out = jax.block_until_ready(out)

    mm_dtype = _default_matmul_dtype()
    ref_same_path = reference_forward(x, params, matmul_dtype=mm_dtype)
    ref_f32 = reference_forward(x, params, matmul_dtype=jnp.float32)

    assert out.shape == (batch, nOutput)
    assert jnp.allclose(out, ref_same_path, atol=2e-3, rtol=2e-3), "mismatch vs same-dtype-path reference"
    assert jnp.allclose(out, ref_f32, atol=5e-2, rtol=5e-2), "mismatch vs f32 reference"

    print("KERNEL_OK")
</pallas_src>

<mosaic_0001>
module attributes {stable_mosaic.version = 11 : i64} {
  func.func @mlp_kernel(%arg0: i32, %arg1: memref<1x1024xf32, #tpu.memory_space<vmem>>, %arg2: memref<4x32x32xbf16, #tpu.memory_space<vmem>>, %arg3: memref<32x8xf32, #tpu.memory_space<vmem>>, %arg4: memref<1x1024xf32, #tpu.memory_space<vmem>>) attributes {dimension_semantics = [#tpu.dimension_semantics<parallel>], iteration_bounds = array<i64: 1>, scalar_prefetch = 0 : i64, scratch_operands = 0 : i64, tpu.core_type = #tpu.core_type<tc>, window_params = [{transform_indices = @transform_0, window_bounds = array<i64: 1, 1024>}, {pipeline_mode = #tpu.pipeline_mode<synchronous>, transform_indices = @transform_1, window_bounds = array<i64: 4, 32, 32>}, {pipeline_mode = #tpu.pipeline_mode<synchronous>, transform_indices = @transform_2, window_bounds = array<i64: 32, 8>}, {transform_indices = @transform_3, window_bounds = array<i64: 1, 1024>}]} {
    %c0 = arith.constant 0 : index
    %c0_0 = arith.constant 0 : index
    %0 = vector.load %arg1[%c0, %c0_0] : memref<1x1024xf32, #tpu.memory_space<vmem>>, vector<1x1024xf32>
    %c0_1 = arith.constant 0 : index
    %c0_2 = arith.constant 0 : index
    %1 = vector.load %arg3[%c0_1, %c0_2] : memref<32x8xf32, #tpu.memory_space<vmem>>, vector<32x8xf32>
    %2 = vector.extract_strided_slice %1 {offsets = [0, 0], sizes = [32, 1], strides = [1, 1]} : vector<32x8xf32> to vector<32x1xf32>
    %3 = vector.extract_strided_slice %1 {offsets = [0, 1], sizes = [32, 1], strides = [1, 1]} : vector<32x8xf32> to vector<32x1xf32>
    %4 = vector.extract_strided_slice %1 {offsets = [0, 2], sizes = [32, 1], strides = [1, 1]} : vector<32x8xf32> to vector<32x1xf32>
    %5 = vector.extract_strided_slice %1 {offsets = [0, 3], sizes = [32, 1], strides = [1, 1]} : vector<32x8xf32> to vector<32x1xf32>
    %6 = vector.extract_strided_slice %1 {offsets = [0, 4], sizes = [32, 1], strides = [1, 1]} : vector<32x8xf32> to vector<32x1xf32>
    %7 = vector.extract_strided_slice %1 {offsets = [0, 5], sizes = [32, 1], strides = [1, 1]} : vector<32x8xf32> to vector<32x1xf32>
    %8 = vector.extract_strided_slice %1 {offsets = [0, 6], sizes = [32, 1], strides = [1, 1]} : vector<32x8xf32> to vector<32x1xf32>
    %9 = vector.extract_strided_slice %1 {offsets = [0, 7], sizes = [1, 1], strides = [1, 1]} : vector<32x8xf32> to vector<1x1xf32>
    %10 = vector.broadcast %2 : vector<32x1xf32> to vector<32x1024xf32>
    %11 = vector.broadcast %0 : vector<1x1024xf32> to vector<32x1024xf32>
    %12 = arith.mulf %10, %11 : vector<32x1024xf32>
    %13 = vector.broadcast %3 : vector<32x1xf32> to vector<32x1024xf32>
    %14 = arith.addf %12, %13 : vector<32x1024xf32>
    %cst = arith.constant 0.000000e+00 : f32
    %15 = vector.broadcast %cst : f32 to vector<32x1024xf32>
    %16 = arith.maximumf %14, %15 : vector<32x1024xf32>
    %17 = arith.truncf %16 : vector<32x1024xf32> to vector<32x1024xbf16>
    %c0_3 = arith.constant 0 : index
    %c0_4 = arith.constant 0 : index
    %c0_5 = arith.constant 0 : index
    %18 = vector.load %arg2[%c0_3, %c0_4, %c0_5] : memref<4x32x32xbf16, #tpu.memory_space<vmem>>, vector<1x32x32xbf16>
    %19 = vector.shape_cast %18 : vector<1x32x32xbf16> to vector<32x32xbf16>
    %cst_6 = arith.constant dense<0.000000e+00> : vector<32x1024xf32>
    %20 = tpu.matmul %19, %17, %cst_6 {dimension_numbers = #tpu.dot_dimension_numbers<[1], [0], [0], [1], [0, 0, 1, 1], [], []>} : vector<32x32xbf16>, vector<32x1024xbf16>, vector<32x1024xf32> -> vector<32x1024xf32>
    %21 = arith.truncf %20 : vector<32x1024xf32> to vector<32x1024xbf16>
    %22 = arith.truncf %4 : vector<32x1xf32> to vector<32x1xbf16>
    %23 = vector.broadcast %22 : vector<32x1xbf16> to vector<32x1024xbf16>
    %24 = arith.addf %21, %23 : vector<32x1024xbf16>
    %cst_7 = arith.constant 0.000000e+00 : bf16
    %25 = vector.broadcast %cst_7 : bf16 to vector<32x1024xbf16>
    %26 = arith.maximumf %24, %25 : vector<32x1024xbf16>
    %c1 = arith.constant 1 : index
    %c0_8 = arith.constant 0 : index
    %c0_9 = arith.constant 0 : index
    %27 = vector.load %arg2[%c1, %c0_8, %c0_9] : memref<4x32x32xbf16, #tpu.memory_space<vmem>>, vector<1x32x32xbf16>
    %28 = vector.shape_cast %27 : vector<1x32x32xbf16> to vector<32x32xbf16>
    %cst_10 = arith.constant dense<0.000000e+00> : vector<32x1024xf32>
    %29 = tpu.matmul %28, %26, %cst_10 {dimension_numbers = #tpu.dot_dimension_numbers<[1], [0], [0], [1], [0, 0, 1, 1], [], []>} : vector<32x32xbf16>, vector<32x1024xbf16>, vector<32x1024xf32> -> vector<32x1024xf32>
    %30 = arith.truncf %29 : vector<32x1024xf32> to vector<32x1024xbf16>
    %31 = arith.truncf %5 : vector<32x1xf32> to vector<32x1xbf16>
    %32 = vector.broadcast %31 : vector<32x1xbf16> to vector<32x1024xbf16>
    %33 = arith.addf %30, %32 : vector<32x1024xbf16>
    %cst_11 = arith.constant 0.000000e+00 : bf16
    %34 = vector.broadcast %cst_11 : bf16 to vector<32x1024xbf16>
    %35 = arith.maximumf %33, %34 : vector<32x1024xbf16>
    %c2 = arith.constant 2 : index
    %c0_12 = arith.constant 0 : index
    %c0_13 = arith.constant 0 : index
    %36 = vector.load %arg2[%c2, %c0_12, %c0_13] : memref<4x32x32xbf16, #tpu.memory_space<vmem>>, vector<1x32x32xbf16>
    %37 = vector.shape_cast %36 : vector<1x32x32xbf16> to vector<32x32xbf16>
    %cst_14 = arith.constant dense<0.000000e+00> : vector<32x1024xf32>
    %38 = tpu.matmul %37, %35, %cst_14 {dimension_numbers = #tpu.dot_dimension_numbers<[1], [0], [0], [1], [0, 0, 1, 1], [], []>} : vector<32x32xbf16>, vector<32x1024xbf16>, vector<32x1024xf32> -> vector<32x1024xf32>
    %39 = arith.truncf %38 : vector<32x1024xf32> to vector<32x1024xbf16>
    %40 = arith.truncf %6 : vector<32x1xf32> to vector<32x1xbf16>
    %41 = vector.broadcast %40 : vector<32x1xbf16> to vector<32x1024xbf16>
    %42 = arith.addf %39, %41 : vector<32x1024xbf16>
    %cst_15 = arith.constant 0.000000e+00 : bf16
    %43 = vector.broadcast %cst_15 : bf16 to vector<32x1024xbf16>
    %44 = arith.maximumf %42, %43 : vector<32x1024xbf16>
    %c3 = arith.constant 3 : index
    %c0_16 = arith.constant 0 : index
    %c0_17 = arith.constant 0 : index
    %45 = vector.load %arg2[%c3, %c0_16, %c0_17] : memref<4x32x32xbf16, #tpu.memory_space<vmem>>, vector<1x32x32xbf16>
    %46 = vector.shape_cast %45 : vector<1x32x32xbf16> to vector<32x32xbf16>
    %cst_18 = arith.constant dense<0.000000e+00> : vector<32x1024xf32>
    %47 = tpu.matmul %46, %44, %cst_18 {dimension_numbers = #tpu.dot_dimension_numbers<[1], [0], [0], [1], [0, 0, 1, 1], [], []>} : vector<32x32xbf16>, vector<32x1024xbf16>, vector<32x1024xf32> -> vector<32x1024xf32>
    %48 = arith.truncf %47 : vector<32x1024xf32> to vector<32x1024xbf16>
    %49 = arith.truncf %7 : vector<32x1xf32> to vector<32x1xbf16>
    %50 = vector.broadcast %49 : vector<32x1xbf16> to vector<32x1024xbf16>
    %51 = arith.addf %48, %50 : vector<32x1024xbf16>
    %cst_19 = arith.constant 0.000000e+00 : bf16
    %52 = vector.broadcast %cst_19 : bf16 to vector<32x1024xbf16>
    %53 = arith.maximumf %51, %52 : vector<32x1024xbf16>
    %54 = arith.extf %53 : vector<32x1024xbf16> to vector<32x1024xf32>
    %55 = vector.broadcast %8 : vector<32x1xf32> to vector<32x1024xf32>
    %56 = arith.mulf %55, %54 : vector<32x1024xf32>
    %cst_20 = arith.constant dense<0.000000e+00> : vector<1024xf32>
    %57 = vector.multi_reduction <add>, %56, %cst_20 [0] : vector<32x1024xf32> to vector<1024xf32>
    %58 = vector.shape_cast %57 : vector<1024xf32> to vector<1x1024xf32>
    %59 = vector.broadcast %9 : vector<1x1xf32> to vector<1x1024xf32>
    %60 = arith.addf %58, %59 : vector<1x1024xf32>
    %c0_21 = arith.constant 0 : index
    %c0_22 = arith.constant 0 : index
    %61 = vector.load %arg4[%c0_21, %c0_22] : memref<1x1024xf32, #tpu.memory_space<vmem>>, vector<1x1024xf32>
    tpu.vector_store %arg4[%c0_21, %c0_22], %60 {strides = array<i32>} : memref<1x1024xf32, #tpu.memory_space<vmem>>, vector<1x1024xf32>,
    return
  }
  func.func @transform_0(%arg0: i32) -> (i32, i32) {
    %c0_i32 = arith.constant 0 : i32
    %c0_i32_0 = arith.constant 0 : i32
    return %c0_i32, %arg0 : i32, i32
  }
  func.func @transform_1(%arg0: i32) -> (i32, i32, i32) {
    %c0_i32 = arith.constant 0 : i32
    %c0_i32_0 = arith.constant 0 : i32
    %c0_i32_1 = arith.constant 0 : i32
    %c0_i32_2 = arith.constant 0 : i32
    return %c0_i32, %c0_i32_0, %c0_i32_1 : i32, i32, i32
  }
  func.func @transform_2(%arg0: i32) -> (i32, i32) {
    %c0_i32 = arith.constant 0 : i32
    %c0_i32_0 = arith.constant 0 : i32
    %c0_i32_1 = arith.constant 0 : i32
    return %c0_i32, %c0_i32_0 : i32, i32
  }
  func.func @transform_3(%arg0: i32) -> (i32, i32) {
    %c0_i32 = arith.constant 0 : i32
    %c0_i32_0 = arith.constant 0 : i32
    return %c0_i32, %arg0 : i32, i32
  }
}

</mosaic_0001>

<bundles_post_ra>
// kernel: tpu_custom_call.1
= control target key start
LH: loop header
LB: loop body
LE: loop exit
PB: predicated region body
PF: predicated region fallthrough
CT: control target
= control target key end

     0   :  { %8 = vsyncpa [#allocation3], 0  ;;  %s2203_s0 = inlined_call_operand.vmem [shape: f32[1,1024], index: 0, kind: input, shape index: {}]   ;;  %s2204_s1 = inlined_call_operand.hbm [shape: bf16[4,32,32], index: 1, kind: input, shape index: {}]   ;;  %s2205_s2 = inlined_call_operand.vmem [shape: f32[32,8], index: 2, kind: input, shape index: {}]   ;;  %s2206_s3 = inlined_call_operand.hbm [shape: f32[1,1024], index: 3, kind: output, shape index: {}]  }
   0x1   :  { %9 = vsyncpa [#allocation4], 0  ;;  %s1743_s12 = smov [#allocation2]  }
   0x2   :  { %s17_s13 = sshll.u32 %s1743_s12, 4  ;;  %s18_s13 = int_to_ptr.vmem [resolvable:$true] %s17_s13 }
   0x3   :  { %s1707_s14 = scalar_lea.vmem %s18_s13, 1024  ;;  %p1712_p1 = scmp.lt.s32.totalorder %s18_s13, %s18_s13 }
   0x4   :  { %p1708_p0 = scmp.ne.s32.totalorder %s18_s13, %s1707_s14  ;;  %p1713_p2 = scmp.lt.s32.totalorder %s1707_s14, %s1707_s14 }
   0x6   :  { %p1714_p3 = por %p1713_p2, %p1712_p1 }
   0x8   :  { %p1715_p4 = pnand %p1714_p3, %p1708_p0 }
   0xa   :  { %1718 = shalt.err (!%p1715_p4)
}
   0xb   :  { %s1744_s15 = smov 64   ;;  %s1745_s16 = smov 4  }
   0xc   :  { %23 = dma.hbm_to_vmem [thread:$0]  %s2204_s1, 1024, %s18_s13, [#allocation3], %s1744_s15, %s1744_s15, %s1745_s16  }
   0xd   :  { %1739 = dma.done.wait [#allocation3], 1024  }
   0xe   :  { %1740 = vsyncadd [#allocation3], 4294966272  ;;  %v1746_v0 = vmov 1   ;;  %v1747_v1 = vmov 0   ;;  %v1785_v2 = vld [vmem:[%s2205_s2 + $0x10] sm:$0xff]  ;;  %v1792_v3 = vld [vmem:[%s2205_s2 + $0x18] sm:$0xff]  ;;  %v56_v9 = vlaneseq }
   0xf   :  { %1676 = vset.pattern.permute.xlu1 %v1746_v0  ;;  %1675 = vset.pattern.permute.xlu0 %v1747_v1  ;;  %v1797_v4 = vld [vmem:[%s2205_s2] sm:$0xff]  ;;  %v1804_v5 = vld [vmem:[%s2205_s2 + $0x8] sm:$0xff]  ;;  %v1817_v7 = vpack.c.bf16 %v1792_v3, %v1785_v2  ;;  %v1748_v8 = vmov 2   ;;  %vm238_vm0 = vcmask 261120  }
  0x10   :  { %277 = vmatprep.mubr.bf16.mxu0 %v1747_v1  ;;  %330 = vmatprep.mubr.bf16.mxu1 %v1747_v1  ;;  %v1813_v6 = vpack.c.bf16 %v1804_v5, %v1797_v4  ;;  %v1821_v10 = vshrl.u32 %v56_v9, 7  ;;  %v30_v15 = vld [vmem:[%s2203_s0] sm:$0xff]  ;;  %s1755_s0 = smov [#allocation5]  }
  0x11   :  { %137 = vperm.xlu1 %1676, %v1785_v2   ;;  %47 = vperm.xlu0 %1675, %v1785_v2   ;;  %s1613_s27 = sshll.u32 %s1755_s0, 4  ;;  %s1614_s27 = int_to_ptr.vmem [resolvable:$true] %s1613_s27 }
  0x12   :  { %v62_v11 = vsub.s32 1, %v1821_v10  ;;  %v70_v12 = vsub.s32 3, %v1821_v10  ;;  %v58_v13 = vsub.s32 0, %v1821_v10  ;;  %v66_v14 = vsub.s32 2, %v1821_v10  ;;  %s1719_s28 = scalar_lea.vmem %s1614_s27, 128  ;;  %p1724_p6 = scmp.lt.s32.totalorder %s1614_s27, %s1614_s27 }
  0x13   :  { %v78_v16 = vsub.s32 5, %v1821_v10  ;;  %v86_v17 = vsub.s32 7, %v1821_v10  ;;  %v74_v18 = vsub.s32 4, %v1821_v10  ;;  %v82_v19 = vsub.s32 6, %v1821_v10  ;;  %p1720_p5 = scmp.ne.s32.totalorder %s1614_s27, %s1719_s28  ;;  %p1725_p7 = scmp.lt.s32.totalorder %s1719_s28, %s1719_s28 }
  0x14   :  { %v63_v20 = vrot.slane %v30_v15, %v62_v11  ;;  %v71_v21 = vrot.slane %v30_v15, %v70_v12  ;;  %v59_v22 = vrot.slane %v30_v15, %v58_v13  ;;  %v67_v23 = vrot.slane %v30_v15, %v66_v14 }
  0x15   :  { %141 = vperm.xlu1 %1676, %v1792_v3   ;;  %52 = vperm.xlu0 %1675, %v1792_v3   ;;  %v1834_v24 = vrot.slane %v30_v15, %v78_v16  ;;  %v1836_v25 = vrot.slane %v30_v15, %v86_v17  ;;  %v1838_v26 = vrot.slane %v30_v15, %v74_v18  ;;  %p1726_p8 = por %p1725_p7, %p1724_p6 }
  0x16   :  { %v1840_v27 = vrot.slane %v30_v15, %v82_v19 }
  0x17   :  { %p1727_p9 = pnand %p1726_p8, %p1720_p5 }
  0x19   :  { %1677 = vset.pattern.permute.xlu1 %v1747_v1  ;;  %37 = vperm.xlu0 %1675, %v1797_v4  }
  0x1a   :  { %42 = vperm.xlu1 %1677, %v1804_v5  }
  0x1d   :  { %1678 = vset.pattern.permute.xlu0 %v1746_v0 }
  0x1e   :  { %1679 = vset.pattern.permute.xlu1 %v1746_v0  ;;  %129 = vperm.xlu0 %1678, %v1797_v4  }
  0x1f   :  { %133 = vperm.xlu1 %1679, %v1804_v5  }
  0x22   :  { %1681 = vset.pattern.permute.xlu0 %v1748_v8 }
  0x23   :  { %1680 = vset.pattern.permute.xlu1 %v1748_v8  ;;  %477 = vperm.xlu0 %1681, %v1813_v6  }
  0x24   :  { %482 = vperm.xlu1 %1680, %v1817_v7  }
  0x8c   :  { %v138_v28 = vpop.permute.xlu1 %137  ;;  %v48_v29 = vpop.permute.xlu0 %47 }
  0x8d   :  { %v113_v30 = vmul.f32 %v63_v20, %v48_v29  ;;  %v115_v31 = vmul.f32 %v71_v21, %v48_v29  ;;  %v112_v32 = vmul.f32 %v59_v22, %v48_v29  ;;  %v114_v33 = vmul.f32 %v67_v23, %v48_v29 }
  0x8e   :  { %v117_v34 = vmul.f32 %v1834_v24, %v48_v29  ;;  %v119_v35 = vmul.f32 %v1836_v25, %v48_v29  ;;  %v116_v36 = vmul.f32 %v1838_v26, %v48_v29  ;;  %v118_v37 = vmul.f32 %v1840_v27, %v48_v29 }
  0x8f   :  { %v161_v38 = vadd.f32 %v138_v28, %v113_v30  ;;  %v163_v39 = vadd.f32 %v138_v28, %v115_v31  ;;  %v160_v40 = vadd.f32 %v138_v28, %v112_v32  ;;  %v162_v41 = vadd.f32 %v138_v28, %v114_v33 }
  0x90   :  { %v1846_v42 = vpop.permute.xlu1 %141  ;;  %v1848_v43 = vpop.permute.xlu0 %52  ;;  %v1850_v44 = vadd.f32 %v138_v28, %v117_v34  ;;  %v1852_v45 = vadd.f32 %v138_v28, %v119_v35  ;;  %v1854_v46 = vadd.f32 %v138_v28, %v116_v36  ;;  %v1858_v50 = vadd.f32 %v138_v28, %v118_v37 }
  0x91   :  { %v121_v47 = vmul.f32 %v63_v20, %v1848_v43  ;;  %v193_v48 = vmax.f32 %v161_v38, 0.0  ;;  %v123_v49 = vmul.f32 %v71_v21, %v1848_v43  ;;  %v195_v51 = vmax.f32 %v163_v39, 0.0 }
  0x92   :  { %v120_v52 = vmul.f32 %v59_v22, %v1848_v43  ;;  %v192_v53 = vmax.f32 %v160_v40, 0.0  ;;  %v122_v54 = vmul.f32 %v67_v23, %v1848_v43  ;;  %v194_v57 = vmax.f32 %v162_v41, 0.0 }
  0x93   :  { %v169_v55 = vadd.f32 %v1846_v42, %v121_v47  ;;  %v171_v56 = vadd.f32 %v1846_v42, %v123_v49  ;;  %v125_v58 = vmul.f32 %v1834_v24, %v1848_v43  ;;  %v197_v62 = vmax.f32 %v1850_v44, 0.0 }
  0x94   :  { %v1866_v59 = vpop.permute.xlu0 %37  ;;  %v168_v60 = vadd.f32 %v1846_v42, %v120_v52  ;;  %v170_v61 = vadd.f32 %v1846_v42, %v122_v54  ;;  %v127_v63 = vmul.f32 %v1836_v25, %v1848_v43  ;;  %v199_v34 = vmax.f32 %v1852_v45, 0.0 }
  0x95   :  { %v1873_v0 = vpop.permute.xlu1 %42  ;;  %v201_v8 = vmax.f32 %v169_v55, 0.0  ;;  %v203_v9 = vmax.f32 %v171_v56, 0.0  ;;  %v97_v11 = vmul.f32 %v63_v20, %v1866_v59  ;;  %v99_v12 = vmul.f32 %v71_v21, %v1866_v59 }
  0x96   :  { %v200_v13 = vmax.f32 %v168_v60, 0.0  ;;  %v202_v14 = vmax.f32 %v170_v61, 0.0  ;;  %v105_v15 = vmul.f32 %v63_v20, %v1873_v0  ;;  %v107_v16 = vmul.f32 %v71_v21, %v1873_v0 }
  0x97   :  { %v217_v17 = vpack.c.bf16 %v201_v8, %v193_v48  ;;  %v219_v18 = vpack.c.bf16 %v203_v9, %v195_v51  ;;  %v96_v19 = vmul.f32 %v59_v22, %v1866_v59  ;;  %v104_v28 = vmul.f32 %v59_v22, %v1873_v0 }
  0x98   :  { %v216_v29 = vpack.c.bf16 %v200_v13, %v192_v53  ;;  %v218_v30 = vpack.c.bf16 %v202_v14, %v194_v57  ;;  %v98_v31 = vmul.f32 %v67_v23, %v1866_v59  ;;  %v106_v32 = vmul.f32 %v67_v23, %v1873_v0  ;;  %v1691_v13 = vld [vmem:[#allocation2] sm:$0xff]  }
  0x99   :  { %v1883_v33 = vpop.permute.xlu0 %129  ;;  %257 = vmatprep.subr.bf16.mxu0 %v217_v17  ;;  %310 = vmatprep.subr.bf16.mxu1 %v219_v18  ;;  %v173_v20 = vadd.f32 %v1846_v42, %v125_v58  ;;  %v175_v21 = vadd.f32 %v1846_v42, %v127_v63  ;;  %v124_v35 = vmul.f32 %v1838_v26, %v1848_v43  ;;  %v196_v38 = vmax.f32 %v1854_v46, 0.0 }
  0x9a   :  { %v1890_v22 = vpop.permute.xlu1 %133  ;;  %258 = vmatpush1.bf16.msra.mxu0 %v216_v29  ;;  %311 = vmatpush1.bf16.msra.mxu1 %v218_v30  ;;  %v145_v36 = vadd.f32 %v1883_v33, %v97_v11  ;;  %v147_v23 = vadd.f32 %v1883_v33, %v99_v12  ;;  %v144_v37 = vadd.f32 %v1883_v33, %v96_v19 }
  0x9b   :  { %v153_v39 = vadd.f32 %v1890_v22, %v105_v15  ;;  %v155_v40 = vadd.f32 %v1890_v22, %v107_v16  ;;  %v152_v41 = vadd.f32 %v1890_v22, %v104_v28  ;;  %v146_v44 = vadd.f32 %v1883_v33, %v98_v31 }
  0x9c   :  { %v177_v45 = vmax.f32 %v145_v36, 0.0  ;;  %v179_v47 = vmax.f32 %v147_v23, 0.0  ;;  %v176_v48 = vmax.f32 %v144_v37, 0.0  ;;  %v154_v49 = vadd.f32 %v1890_v22, %v106_v32 }
  0x9d   :  { %v185_v51 = vmax.f32 %v153_v39, 0.0  ;;  %v187_v52 = vmax.f32 %v155_v40, 0.0  ;;  %v184_v53 = vmax.f32 %v152_v41, 0.0  ;;  %v178_v54 = vmax.f32 %v146_v44, 0.0  ;;  %v1692_v44 = vld [vmem:[#allocation2 + $0x8] sm:$0xff]  }
  0x9e   :  { %v186_v55 = vmax.f32 %v154_v49, 0.0  ;;  %v205_v56 = vmax.f32 %v173_v20, 0.0  ;;  %v207_v46 = vmax.f32 %v175_v21, 0.0  ;;  %v172_v57 = vadd.f32 %v1846_v42, %v124_v35 }
  0x9f   :  { %v209_v58 = vpack.c.bf16 %v185_v51, %v177_v45  ;;  %v211_v60 = vpack.c.bf16 %v187_v52, %v179_v47  ;;  %v208_v61 = vpack.c.bf16 %v184_v53, %v176_v48  ;;  %v126_v63 = vmul.f32 %v1840_v27, %v1848_v43 }
  0xa0   :  { %v210_v8 = vpack.c.bf16 %v186_v55, %v178_v54  ;;  %v221_v9 = vpack.c.bf16 %v205_v56, %v197_v62  ;;  %v223_v11 = vpack.c.bf16 %v207_v46, %v199_v34  ;;  %v204_v12 = vmax.f32 %v172_v57, 0.0 }
  0xa1   :  { %259 = vmatprep.subr.bf16.mxu0 %v209_v58  ;;  %312 = vmatprep.subr.bf16.mxu1 %v211_v60  ;;  %v174_v14 = vadd.f32 %v1846_v42, %v126_v63  ;;  %v101_v15 = vmul.f32 %v1834_v24, %v1866_v59  ;;  %v109_v16 = vmul.f32 %v1834_v24, %v1873_v0  ;;  %v198_v43 = vmax.f32 %v1858_v50, 0.0 }
  0xa2   :  { %260 = vmatpush1.bf16.msra.mxu0 %v208_v61  ;;  %313 = vmatpush1.bf16.msra.mxu1 %v210_v8  ;;  %v220_v17 = vpack.c.bf16 %v204_v12, %v196_v38  ;;  %v103_v62 = vmul.f32 %v1836_v25, %v1866_v59  ;;  %v111_v18 = vmul.f32 %v1836_v25, %v1873_v0 }
  0xa3   :  { %363 = vmatprep.subr.bf16.mxu0 %v221_v9  ;;  %416 = vmatprep.subr.bf16.mxu1 %v223_v11  ;;  %v206_v42 = vmax.f32 %v174_v14, 0.0  ;;  %v149_v19 = vadd.f32 %v1883_v33, %v101_v15  ;;  %v157_v28 = vadd.f32 %v1890_v22, %v109_v16  ;;  %v100_v24 = vmul.f32 %v1838_v26, %v1866_v59  ;;  %v1948_v9 = vpop.permute.xlu1 %482  ;;  %v1950_v14 = vpop.permute.xlu0 %477 }
  0xa4   :  { %v151_v29 = vadd.f32 %v1883_v33, %v103_v62  ;;  %v159_v50 = vadd.f32 %v1890_v22, %v111_v18  ;;  %v108_v30 = vmul.f32 %v1838_v26, %v1873_v0  ;;  %v102_v25 = vmul.f32 %v1840_v27, %v1866_v59 }
  0xa5   :  { %1624 = vmatmul.mubr.msk.bf16.vlgmr.msra.gmra.mxu0 %vm238_vm0, %v1691_v13  ;;  %1626 = vmatmul.mubr.msk.bf16.vlgmr.msra.gmra.mxu1 %vm238_vm0, %v1691_v13  ;;  %v222_v31 = vpack.c.bf16 %v206_v42, %v198_v43  ;;  %v181_v32 = vmax.f32 %v149_v19, 0.0  ;;  %v189_v20 = vmax.f32 %v157_v28, 0.0  ;;  %v148_v21 = vadd.f32 %v1883_v33, %v100_v24 }
  0xa6   :  { %364 = vmatpush1.bf16.msra.mxu0 %v220_v17  ;;  %v183_v34 = vmax.f32 %v151_v29, 0.0  ;;  %v191_v35 = vmax.f32 %v159_v50, 0.0  ;;  %v156_v36 = vadd.f32 %v1890_v22, %v108_v30  ;;  %v110_v26 = vmul.f32 %v1840_v27, %v1873_v0  ;;  %287 = vmatprep.mubr.bf16.mxu0 %v1747_v1 }
  0xa7   :  { %417 = vmatpush1.bf16.msra.mxu1 %v222_v31  ;;  %v213_v59 = vpack.c.bf16 %v189_v20, %v181_v32  ;;  %v180_v23 = vmax.f32 %v148_v21, 0.0  ;;  %v150_v37 = vadd.f32 %v1883_v33, %v102_v25  ;;  %340 = vmatprep.mubr.bf16.mxu1 %v1747_v1  ;;  %v1749_v0 = vmov 3  }
  0xa8   :  { %v215_v38 = vpack.c.bf16 %v191_v35, %v183_v34  ;;  %v188_v39 = vmax.f32 %v156_v36, 0.0  ;;  %v158_v40 = vadd.f32 %v1890_v22, %v110_v26  ;;  %1682 = vset.pattern.permute.xlu1 %v1749_v0 }
  0xa9   :  { %365 = vmatprep.subr.bf16.mxu0 %v213_v59  ;;  %v182_v41 = vmax.f32 %v150_v37, 0.0  ;;  %771 = vperm.xlu1 %1682, %v1817_v7  }
  0xaa   :  { %418 = vmatprep.subr.bf16.mxu1 %v215_v38  ;;  %v212_v45 = vpack.c.bf16 %v188_v39, %v180_v23  ;;  %v190_v47 = vmax.f32 %v158_v40, 0.0 }
  0xac   :  { %366 = vmatpush1.bf16.msra.mxu0 %v212_v45  ;;  %v214_v27 = vpack.c.bf16 %v190_v47, %v182_v41  ;;  %v1693_v45 = vld [vmem:[#allocation2 + $0x10] sm:$0xff]  }
  0xad   :  { %1625 = vmatmul.mubr.msk.bf16.gmra.mxu0 %vm238_vm0, %v1692_v44  ;;  %1627 = vmatmul.mubr.msk.bf16.gmra.mxu1 %vm238_vm0, %v1692_v44 }
  0xae   :  { %419 = vmatpush1.bf16.msra.mxu1 %v214_v27  ;;  %383 = vmatprep.mubr.bf16.mxu0 %v1747_v1 }
  0xaf   :  { %436 = vmatprep.mubr.bf16.mxu1 %v1747_v1  ;;  %767 = vperm.xlu1 %1682, %v1813_v6  }
  0xb5   :  { %1628 = vmatmul.mubr.msk.bf16.vlgmr.msra.gmra.mxu0 %vm238_vm0, %v1691_v13  ;;  %1630 = vmatmul.mubr.msk.bf16.vlgmr.msra.gmra.mxu1 %vm238_vm0, %v1691_v13 }
  0xb6   :  { %393 = vmatprep.mubr.bf16.mxu0 %v1747_v1  ;;  %446 = vmatprep.mubr.bf16.mxu1 %v1747_v1 }
  0xbd   :  { %1629 = vmatmul.mubr.msk.bf16.gmra.mxu0 %vm238_vm0, %v1692_v44  ;;  %1631 = vmatmul.mubr.msk.bf16.gmra.mxu1 %vm238_vm0, %v1692_v44 }
  0xbe   :  { %570 = vmatprep.mubr.bf16.mxu0 %v1747_v1  ;;  %623 = vmatprep.mubr.bf16.mxu1 %v1747_v1 }
 0x165   :  { %v279_v33 = vpop.f32.mrf.mxu0  ;;  %v332_v22 = vpop.f32.mrf.mxu1 }
 0x167   :  { %v281_v48 = vpop.f32.mrf.mxu0  ;;  %v334_v49 = vpop.f32.mrf.mxu1 }
 0x169   :  { %v283_v51 = vpop.f32.mrf.mxu0  ;;  %v336_v52 = vpop.f32.mrf.mxu1 }
 0x16a   :  { %v457_v17 = vpack.c.bf16 %v283_v51, %v279_v33  ;;  %v459_v43 = vpack.c.bf16 %v336_v52, %v332_v22 }
 0x16b   :  { %v285_v53 = vpop.f32.mrf.mxu0  ;;  %v338_v54 = vpop.f32.mrf.mxu1 }
 0x16c   :  { %v458_v61 = vpack.c.bf16 %v285_v53, %v281_v48  ;;  %v460_v11 = vpack.c.bf16 %v338_v54, %v334_v49  ;;  %v485_v36 = vadd.bf16 %v1950_v14, %v457_v17  ;;  %v487_v26 = vadd.bf16 %v1950_v14, %v459_v43 }
 0x16d   :  { %v289_v55 = vpop.f32.mrf.mxu0  ;;  %v342_v56 = vpop.f32.mrf.mxu1 }
 0x16e   :  { %v486_v28 = vadd.bf16 %v1950_v14, %v458_v61  ;;  %v488_v50 = vadd.bf16 %v1950_v14, %v460_v11  ;;  %v501_v41 = vmax.bf16 %v1747_v1, %v485_v36  ;;  %v503_v44 = vmax.bf16 %v1747_v1, %v487_v26 }
 0x16f   :  { %v291_v46 = vpop.f32.mrf.mxu0  ;;  %v344_v57 = vpop.f32.mrf.mxu1 }
 0x170   :  { %v502_v59 = vmax.bf16 %v1747_v1, %v486_v28  ;;  %v504_v38 = vmax.bf16 %v1747_v1, %v488_v50 }
 0x171   :  { %v293_v58 = vpop.f32.mrf.mxu0  ;;  %v346_v60 = vpop.f32.mrf.mxu1 }
 0x172   :  { %v465_v63 = vpack.c.bf16 %v293_v58, %v289_v55  ;;  %v467_v8 = vpack.c.bf16 %v346_v60, %v342_v56 }
 0x173   :  { %v295_v12 = vpop.f32.mrf.mxu0  ;;  %v348_v13 = vpop.f32.mrf.mxu1 }
 0x174   :  { %v466_v15 = vpack.c.bf16 %v295_v12, %v291_v46  ;;  %v468_v16 = vpack.c.bf16 %v348_v13, %v344_v57  ;;  %v493_v42 = vadd.bf16 %v1948_v9, %v465_v63  ;;  %v495_v19 = vadd.bf16 %v1948_v9, %v467_v8  ;;  %v1694_v63 = vld [vmem:[#allocation2 + $0x18] sm:$0xff]  }
 0x175   :  { %v1952_v62 = vpop.f32.mrf.mxu0  ;;  %v1954_v18 = vpop.f32.mrf.mxu1 }
 0x176   :  { %v494_v24 = vadd.bf16 %v1948_v9, %v466_v15  ;;  %v496_v29 = vadd.bf16 %v1948_v9, %v468_v16  ;;  %v509_v34 = vmax.bf16 %v1747_v1, %v493_v42  ;;  %v511_v35 = vmax.bf16 %v1747_v1, %v495_v19 }
 0x177   :  { %v387_v30 = vpop.f32.mrf.mxu0  ;;  %v440_v25 = vpop.f32.mrf.mxu1  ;;  %v1750_v42 = vmov 4  }
 0x178   :  { %v510_v31 = vmax.bf16 %v1747_v1, %v494_v24  ;;  %v512_v32 = vmax.bf16 %v1747_v1, %v496_v29  ;;  %1684 = vset.pattern.permute.xlu1 %v1750_v42  ;;  %1683 = vset.pattern.permute.xlu0 %v1750_v42 }
 0x179   :  { %v389_v20 = vpop.f32.mrf.mxu0  ;;  %v442_v21 = vpop.f32.mrf.mxu1  ;;  %1056 = vperm.xlu1 %1684, %v1813_v6   ;;  %1060 = vperm.xlu0 %1683, %v1817_v7  }
 0x17a   :  { %550 = vmatprep.subr.bf16.mxu0 %v510_v31  ;;  %603 = vmatprep.subr.bf16.mxu1 %v512_v32  ;;  %v461_v56 = vpack.c.bf16 %v389_v20, %v1952_v62  ;;  %v463_v46 = vpack.c.bf16 %v442_v21, %v1954_v18  ;;  %v2008_v21 = vpop.permute.xlu1 %771 }
 0x17b   :  { %v391_v23 = vpop.f32.mrf.mxu0  ;;  %v444_v37 = vpop.f32.mrf.mxu1  ;;  %551 = vmatpush1.bf16.msra.mxu0 %v509_v34  ;;  %604 = vmatpush1.bf16.msra.mxu1 %v511_v35 }
 0x17c   :  { %552 = vmatprep.subr.bf16.mxu0 %v502_v59  ;;  %605 = vmatprep.subr.bf16.mxu1 %v504_v38  ;;  %v462_v49 = vpack.c.bf16 %v391_v23, %v387_v30  ;;  %v464_v51 = vpack.c.bf16 %v444_v37, %v440_v25  ;;  %v489_v15 = vadd.bf16 %v1950_v14, %v461_v56 }
 0x17d   :  { %v395_v39 = vpop.f32.mrf.mxu0  ;;  %v448_v40 = vpop.f32.mrf.mxu1  ;;  %v491_v16 = vadd.bf16 %v1950_v14, %v463_v46 }
 0x17e   :  { %v490_v8 = vadd.bf16 %v1950_v14, %v462_v49  ;;  %v492_v11 = vadd.bf16 %v1950_v14, %v464_v51  ;;  %v505_v14 = vmax.bf16 %v1747_v1, %v489_v15 }
 0x17f   :  { %v397_v47 = vpop.f32.mrf.mxu0  ;;  %v450_v27 = vpop.f32.mrf.mxu1  ;;  %553 = vmatpush1.bf16.msra.mxu0 %v501_v41  ;;  %606 = vmatpush1.bf16.msra.mxu1 %v503_v44  ;;  %v507_v18 = vmax.bf16 %v1747_v1, %v491_v16 }
 0x180   :  { %v508_v62 = vmax.bf16 %v1747_v1, %v492_v11 }
 0x181   :  { %v399_v0 = vpop.f32.mrf.mxu0  ;;  %v452_v33 = vpop.f32.mrf.mxu1 }
 0x182   :  { %v469_v22 = vpack.c.bf16 %v399_v0, %v395_v39  ;;  %v471_v48 = vpack.c.bf16 %v452_v33, %v448_v40  ;;  %1634 = vmatmul.mubr.msk.bf16.vlgmr.msra.gmra.mxu0 %vm238_vm0, %v1693_v45  ;;  %1636 = vmatmul.mubr.msk.bf16.vlgmr.msra.gmra.mxu1 %vm238_vm0, %v1693_v45 }
 0x183   :  { %v401_v52 = vpop.f32.mrf.mxu0  ;;  %v454_v53 = vpop.f32.mrf.mxu1  ;;  %580 = vmatprep.mubr.bf16.mxu0 %v1747_v1  ;;  %633 = vmatprep.mubr.bf16.mxu1 %v1747_v1 }
 0x184   :  { %v470_v54 = vpack.c.bf16 %v401_v52, %v397_v47  ;;  %v472_v55 = vpack.c.bf16 %v454_v53, %v450_v27  ;;  %v497_v57 = vadd.bf16 %v1948_v9, %v469_v22  ;;  %v499_v58 = vadd.bf16 %v1948_v9, %v471_v48  ;;  %v2010_v27 = vpop.permute.xlu1 %767 }
 0x186   :  { %v498_v60 = vadd.bf16 %v1948_v9, %v470_v54  ;;  %v500_v61 = vadd.bf16 %v1948_v9, %v472_v55  ;;  %v513_v17 = vmax.bf16 %v1747_v1, %v497_v57  ;;  %v515_v43 = vmax.bf16 %v1747_v1, %v499_v58 }
 0x187   :  { %v506_v9 = vmax.bf16 %v1747_v1, %v490_v8 }
 0x188   :  { %v514_v12 = vmax.bf16 %v1747_v1, %v498_v60  ;;  %v516_v13 = vmax.bf16 %v1747_v1, %v500_v61 }
 0x18a   :  { %1635 = vmatmul.mubr.msk.bf16.gmra.mxu0 %vm238_vm0, %v1694_v63  ;;  %1637 = vmatmul.mubr.msk.bf16.gmra.mxu1 %vm238_vm0, %v1694_v63 }
 0x18b   :  { %656 = vmatprep.subr.bf16.mxu0 %v514_v12  ;;  %709 = vmatprep.subr.bf16.mxu1 %v516_v13 }
 0x18c   :  { %657 = vmatpush1.bf16.msra.mxu0 %v513_v17  ;;  %710 = vmatpush1.bf16.msra.mxu1 %v515_v43 }
 0x18d   :  { %658 = vmatprep.subr.bf16.mxu0 %v506_v9  ;;  %711 = vmatprep.subr.bf16.mxu1 %v508_v62  ;;  %v1695_v62 = vld [vmem:[#allocation2 + $0x20] sm:$0xff]  }
 0x18e   :  { %676 = vmatprep.mubr.bf16.mxu0 %v1747_v1  ;;  %729 = vmatprep.mubr.bf16.mxu1 %v1747_v1 }
 0x190   :  { %659 = vmatpush1.bf16.msra.mxu0 %v505_v14  ;;  %712 = vmatpush1.bf16.msra.mxu1 %v507_v18 }
 0x193   :  { %1638 = vmatmul.mubr.msk.bf16.vlgmr.msra.gmra.mxu0 %vm238_vm0, %v1693_v45  ;;  %1640 = vmatmul.mubr.msk.bf16.vlgmr.msra.gmra.mxu1 %vm238_vm0, %v1693_v45 }
 0x194   :  { %686 = vmatprep.mubr.bf16.mxu0 %v1747_v1  ;;  %739 = vmatprep.mubr.bf16.mxu1 %v1747_v1 }
 0x19b   :  { %1639 = vmatmul.mubr.msk.bf16.gmra.mxu0 %vm238_vm0, %v1694_v63  ;;  %1641 = vmatmul.mubr.msk.bf16.gmra.mxu1 %vm238_vm0, %v1694_v63 }
 0x19c   :  { %859 = vmatprep.mubr.bf16.mxu0 %v1747_v1  ;;  %912 = vmatprep.mubr.bf16.mxu1 %v1747_v1 }
 0x242   :  { %v572_v19 = vpop.f32.mrf.mxu0  ;;  %v625_v28 = vpop.f32.mrf.mxu1 }
 0x244   :  { %v574_v24 = vpop.f32.mrf.mxu0  ;;  %v627_v29 = vpop.f32.mrf.mxu1 }
 0x246   :  { %v576_v50 = vpop.f32.mrf.mxu0  ;;  %v629_v30 = vpop.f32.mrf.mxu1 }
 0x247   :  { %v750_v45 = vpack.c.bf16 %v576_v50, %v572_v19  ;;  %v752_v47 = vpack.c.bf16 %v629_v30, %v625_v28 }
 0x248   :  { %v578_v25 = vpop.f32.mrf.mxu0  ;;  %v631_v31 = vpop.f32.mrf.mxu1 }
 0x249   :  { %v751_v59 = vpack.c.bf16 %v578_v25, %v574_v24  ;;  %v753_v23 = vpack.c.bf16 %v631_v31, %v627_v29  ;;  %v774_v60 = vadd.bf16 %v2010_v27, %v750_v45  ;;  %v776_v12 = vadd.bf16 %v2010_v27, %v752_v47 }
 0x24a   :  { %v582_v32 = vpop.f32.mrf.mxu0  ;;  %v635_v20 = vpop.f32.mrf.mxu1 }
 0x24b   :  { %v775_v22 = vadd.bf16 %v2010_v27, %v751_v59  ;;  %v777_v48 = vadd.bf16 %v2010_v27, %v753_v23  ;;  %v790_v16 = vmax.bf16 %v1747_v1, %v774_v60  ;;  %v792_v9 = vmax.bf16 %v1747_v1, %v776_v12 }
 0x24c   :  { %v584_v34 = vpop.f32.mrf.mxu0  ;;  %v637_v35 = vpop.f32.mrf.mxu1 }
 0x24d   :  { %v791_v8 = vmax.bf16 %v1747_v1, %v775_v22  ;;  %v793_v11 = vmax.bf16 %v1747_v1, %v777_v48  ;;  %v1751_v22 = vmov 5   ;;  %v1752_v48 = vmov 6  }
 0x24e   :  { %v586_v36 = vpop.f32.mrf.mxu0  ;;  %v639_v26 = vpop.f32.mrf.mxu1  ;;  %1685 = vset.pattern.permute.xlu1 %v1751_v22  ;;  %1686 = vset.pattern.permute.xlu0 %v1751_v22 }
 0x24f   :  { %v758_v37 = vpack.c.bf16 %v586_v36, %v582_v32  ;;  %v760_v38 = vpack.c.bf16 %v639_v26, %v635_v20  ;;  %v1696_v36 = vld [vmem:[#allocation2 + $0x28] sm:$0xff]   ;;  %1345 = vperm.xlu1 %1685, %v1813_v6   ;;  %1349 = vperm.xlu0 %1686, %v1817_v7  }
 0x250   :  { %v588_v39 = vpop.f32.mrf.mxu0  ;;  %v641_v40 = vpop.f32.mrf.mxu1 }
 0x251   :  { %v759_v41 = vpack.c.bf16 %v588_v39, %v584_v34  ;;  %v761_v44 = vpack.c.bf16 %v641_v40, %v637_v35  ;;  %v782_v0 = vadd.bf16 %v2008_v21, %v758_v37  ;;  %v784_v33 = vadd.bf16 %v2008_v21, %v760_v38 }
 0x253   :  { %v783_v49 = vadd.bf16 %v2008_v21, %v759_v41  ;;  %v785_v51 = vadd.bf16 %v2008_v21, %v761_v44  ;;  %v678_v52 = vpop.f32.mrf.mxu0  ;;  %v731_v53 = vpop.f32.mrf.mxu1  ;;  %v798_v57 = vmax.bf16 %v1747_v1, %v782_v0  ;;  %v800_v58 = vmax.bf16 %v1747_v1, %v784_v33  ;;  %1687 = vset.pattern.permute.xlu1 %v1752_v48 }
 0x254   :  { %1688 = vset.pattern.permute.xlu0 %v1752_v48  ;;  %1417 = vperm.xlu1 %1687, %v1797_v4  }
 0x255   :  { %v680_v54 = vpop.f32.mrf.mxu0  ;;  %v733_v55 = vpop.f32.mrf.mxu1  ;;  %v799_v56 = vmax.bf16 %v1747_v1, %v783_v49  ;;  %v801_v46 = vmax.bf16 %v1747_v1, %v785_v51  ;;  %1425 = vperm.xlu0 %1688, %v1785_v2   ;;  %v1753_v49 = vmov 7  }
 0x257   :  { %v682_v61 = vpop.f32.mrf.mxu0  ;;  %v735_v63 = vpop.f32.mrf.mxu1  ;;  %839 = vmatprep.subr.bf16.mxu0 %v799_v56  ;;  %892 = vmatprep.subr.bf16.mxu1 %v801_v46 }
 0x258   :  { %840 = vmatpush1.bf16.msra.mxu0 %v798_v57  ;;  %893 = vmatpush1.bf16.msra.mxu1 %v800_v58  ;;  %v754_v20 = vpack.c.bf16 %v682_v61, %v678_v52  ;;  %v756_v34 = vpack.c.bf16 %v735_v63, %v731_v53 }
 0x259   :  { %v684_v13 = vpop.f32.mrf.mxu0  ;;  %v737_v15 = vpop.f32.mrf.mxu1  ;;  %841 = vmatprep.subr.bf16.mxu0 %v791_v8  ;;  %894 = vmatprep.subr.bf16.mxu1 %v793_v11 }
 0x25a   :  { %v755_v28 = vpack.c.bf16 %v684_v13, %v680_v54  ;;  %v757_v50 = vpack.c.bf16 %v737_v15, %v733_v55  ;;  %v778_v41 = vadd.bf16 %v2010_v27, %v754_v20  ;;  %v780_v45 = vadd.bf16 %v2010_v27, %v756_v34  ;;  %1421 = vperm.xlu1 %1687, %v1804_v5  }
 0x25b   :  { %v688_v17 = vpop.f32.mrf.mxu0  ;;  %v741_v43 = vpop.f32.mrf.mxu1  ;;  %1690 = vset.pattern.permute.xlu0 %v1753_v49 }
 0x25c   :  { %842 = vmatpush1.bf16.msra.mxu0 %v790_v16  ;;  %895 = vmatpush1.bf16.msra.mxu1 %v792_v9  ;;  %v779_v26 = vadd.bf16 %v2010_v27, %v755_v28  ;;  %v781_v38 = vadd.bf16 %v2010_v27, %v757_v50  ;;  %v794_v33 = vmax.bf16 %v1747_v1, %v778_v41  ;;  %v2069_v16 = vpop.permute.xlu1 %1056  ;;  %v1697_v41 = vld [vmem:[#allocation2 + $0x30] sm:$0xff]  }
 0x25d   :  { %v690_v14 = vpop.f32.mrf.mxu0  ;;  %v743_v18 = vpop.f32.mrf.mxu1  ;;  %v796_v27 = vmax.bf16 %v1747_v1, %v780_v45 }
 0x25e   :  { %v797_v0 = vmax.bf16 %v1747_v1, %v781_v38  ;;  %1429 = vperm.xlu1 %1687, %v1792_v3   ;;  %v2067_v3 = vpop.permute.xlu0 %1060 }
 0x25f   :  { %v692_v42 = vpop.f32.mrf.mxu0  ;;  %v745_v19 = vpop.f32.mrf.mxu1  ;;  %1644 = vmatmul.mubr.msk.bf16.vlgmr.msra.gmra.mxu0 %vm238_vm0, %v1695_v62  ;;  %1646 = vmatmul.mubr.msk.bf16.vlgmr.msra.gmra.mxu1 %vm238_vm0, %v1695_v62 }
 0x260   :  { %v762_v24 = vpack.c.bf16 %v692_v42, %v688_v17  ;;  %v764_v29 = vpack.c.bf16 %v745_v19, %v741_v43  ;;  %869 = vmatprep.mubr.bf16.mxu0 %v1747_v1  ;;  %922 = vmatprep.mubr.bf16.mxu1 %v1747_v1 }
 0x261   :  { %v694_v30 = vpop.f32.mrf.mxu0  ;;  %v747_v25 = vpop.f32.mrf.mxu1 }
 0x262   :  { %v763_v31 = vpack.c.bf16 %v694_v30, %v690_v14  ;;  %v765_v32 = vpack.c.bf16 %v747_v25, %v743_v18  ;;  %v786_v35 = vadd.bf16 %v2008_v21, %v762_v24  ;;  %v788_v59 = vadd.bf16 %v2008_v21, %v764_v29  ;;  %1689 = vset.pattern.permute.xlu1 %v1753_v49 }
 0x263   :  { %1537 = vperm.xlu1 %1689, %v1797_v4  }
 0x264   :  { %v787_v23 = vadd.bf16 %v2008_v21, %v763_v31  ;;  %v789_v37 = vadd.bf16 %v2008_v21, %v765_v32  ;;  %v802_v44 = vmax.bf16 %v1747_v1, %v786_v35  ;;  %v804_v47 = vmax.bf16 %v1747_v1, %v788_v59 }
 0x265   :  { %v795_v21 = vmax.bf16 %v1747_v1, %v779_v26 }
 0x266   :  { %v803_v39 = vmax.bf16 %v1747_v1, %v787_v23  ;;  %v805_v40 = vmax.bf16 %v1747_v1, %v789_v37 }
 0x267   :  { %1645 = vmatmul.mubr.msk.bf16.gmra.mxu0 %vm238_vm0, %v1696_v36  ;;  %1647 = vmatmul.mubr.msk.bf16.gmra.mxu1 %vm238_vm0, %v1696_v36 }
 0x268   :  { %945 = vmatprep.subr.bf16.mxu0 %v803_v39  ;;  %998 = vmatprep.subr.bf16.mxu1 %v805_v40 }
 0x269   :  { %946 = vmatpush1.bf16.msra.mxu0 %v802_v44  ;;  %999 = vmatpush1.bf16.msra.mxu1 %v804_v47 }
 0x26a   :  { %947 = vmatprep.subr.bf16.mxu0 %v795_v21  ;;  %1000 = vmatprep.subr.bf16.mxu1 %v797_v0 }
 0x26b   :  { %965 = vmatprep.mubr.bf16.mxu0 %v1747_v1  ;;  %1018 = vmatprep.mubr.bf16.mxu1 %v1747_v1 }
 0x26d   :  { %948 = vmatpush1.bf16.msra.mxu0 %v794_v33  ;;  %1001 = vmatpush1.bf16.msra.mxu1 %v796_v27 }
 0x270   :  { %1648 = vmatmul.mubr.msk.bf16.vlgmr.msra.gmra.mxu0 %vm238_vm0, %v1695_v62  ;;  %1650 = vmatmul.mubr.msk.bf16.vlgmr.msra.gmra.mxu1 %vm238_vm0, %v1695_v62 }
 0x271   :  { %975 = vmatprep.mubr.bf16.mxu0 %v1747_v1  ;;  %1028 = vmatprep.mubr.bf16.mxu1 %v1747_v1 }
 0x278   :  { %1649 = vmatmul.mubr.msk.bf16.gmra.mxu0 %vm238_vm0, %v1696_v36  ;;  %1651 = vmatmul.mubr.msk.bf16.gmra.mxu1 %vm238_vm0, %v1696_v36 }
 0x279   :  { %1148 = vmatprep.mubr.bf16.mxu0 %v1747_v1  ;;  %1201 = vmatprep.mubr.bf16.mxu1 %v1747_v1 }
 0x31f   :  { %v861_v51 = vpop.f32.mrf.mxu0  ;;  %v914_v6 = vpop.f32.mrf.mxu1 }
 0x321   :  { %v863_v52 = vpop.f32.mrf.mxu0  ;;  %v916_v7 = vpop.f32.mrf.mxu1 }
 0x323   :  { %v865_v53 = vpop.f32.mrf.mxu0  ;;  %v918_v54 = vpop.f32.mrf.mxu1 }
 0x324   :  { %v1039_v15 = vpack.c.bf16 %v865_v53, %v861_v51  ;;  %v1041_v9 = vpack.c.bf16 %v918_v54, %v914_v6  ;;  %v1698_v54 = vld [vmem:[#allocation2 + $0x38] sm:$0xff]  }
 0x325   :  { %v867_v55 = vpop.f32.mrf.mxu0  ;;  %v920_v56 = vpop.f32.mrf.mxu1 }
 0x326   :  { %v1040_v60 = vpack.c.bf16 %v867_v55, %v863_v52  ;;  %v1042_v8 = vpack.c.bf16 %v920_v56, %v916_v7  ;;  %v1063_v32 = vadd.bf16 %v2069_v16, %v1039_v15  ;;  %v1065_v36 = vadd.bf16 %v2069_v16, %v1041_v9 }
 0x327   :  { %v871_v46 = vpop.f32.mrf.mxu0  ;;  %v924_v57 = vpop.f32.mrf.mxu1 }
 0x328   :  { %v1064_v62 = vadd.bf16 %v2069_v16, %v1040_v60  ;;  %v1066_v19 = vadd.bf16 %v2069_v16, %v1042_v8  ;;  %v1079_v38 = vmax.bf16 %v1747_v1, %v1063_v32  ;;  %v1081_v40 = vmax.bf16 %v1747_v1, %v1065_v36 }
 0x329   :  { %v873_v2 = vpop.f32.mrf.mxu0  ;;  %v926_v58 = vpop.f32.mrf.mxu1 }
 0x32a   :  { %v1080_v35 = vmax.bf16 %v1747_v1, %v1064_v62  ;;  %v1082_v59 = vmax.bf16 %v1747_v1, %v1066_v19 }
 0x32b   :  { %v875_v5 = vpop.f32.mrf.mxu0  ;;  %v928_v63 = vpop.f32.mrf.mxu1 }
 0x32c   :  { %v1047_v61 = vpack.c.bf16 %v875_v5, %v871_v46  ;;  %v1049_v4 = vpack.c.bf16 %v928_v63, %v924_v57 }
 0x32d   :  { %v877_v11 = vpop.f32.mrf.mxu0  ;;  %v930_v13 = vpop.f32.mrf.mxu1 }
 0x32e   :  { %v1048_v12 = vpack.c.bf16 %v877_v11, %v873_v2  ;;  %v1050_v17 = vpack.c.bf16 %v930_v13, %v926_v58  ;;  %v1071_v43 = vadd.bf16 %v2067_v3, %v1047_v61  ;;  %v1073_v42 = vadd.bf16 %v2067_v3, %v1049_v4 }
 0x330   :  { %v1072_v14 = vadd.bf16 %v2067_v3, %v1048_v12  ;;  %v967_v18 = vpop.f32.mrf.mxu0  ;;  %v1074_v28 = vadd.bf16 %v2067_v3, %v1050_v17  ;;  %v1020_v24 = vpop.f32.mrf.mxu1  ;;  %v1087_v31 = vmax.bf16 %v1747_v1, %v1071_v43  ;;  %v1089_v34 = vmax.bf16 %v1747_v1, %v1073_v42 }
 0x332   :  { %v969_v29 = vpop.f32.mrf.mxu0  ;;  %v1088_v50 = vmax.bf16 %v1747_v1, %v1072_v14  ;;  %v1022_v30 = vpop.f32.mrf.mxu1  ;;  %v1090_v25 = vmax.bf16 %v1747_v1, %v1074_v28 }
 0x334   :  { %v971_v20 = vpop.f32.mrf.mxu0  ;;  %1128 = vmatprep.subr.bf16.mxu0 %v1088_v50  ;;  %v1024_v26 = vpop.f32.mrf.mxu1  ;;  %1181 = vmatprep.subr.bf16.mxu1 %v1090_v25 }
 0x335   :  { %1129 = vmatpush1.bf16.msra.mxu0 %v1087_v31  ;;  %1182 = vmatpush1.bf16.msra.mxu1 %v1089_v34  ;;  %v1043_v52 = vpack.c.bf16 %v971_v20, %v967_v18  ;;  %v1045_v55 = vpack.c.bf16 %v1024_v26, %v1020_v24 }
 0x336   :  { %v973_v23 = vpop.f32.mrf.mxu0  ;;  %1130 = vmatprep.subr.bf16.mxu0 %v1080_v35  ;;  %v1026_v37 = vpop.f32.mrf.mxu1  ;;  %1183 = vmatprep.subr.bf16.mxu1 %v1082_v59 }
 0x337   :  { %v1044_v0 = vpack.c.bf16 %v973_v23, %v969_v29  ;;  %v1046_v22 = vpack.c.bf16 %v1026_v37, %v1022_v30  ;;  %v1067_v60 = vadd.bf16 %v2069_v16, %v1043_v52  ;;  %v1069_v8 = vadd.bf16 %v2069_v16, %v1045_v55 }
 0x338   :  { %v977_v39 = vpop.f32.mrf.mxu0  ;;  %v1030_v44 = vpop.f32.mrf.mxu1 }
 0x339   :  { %1131 = vmatpush1.bf16.msra.mxu0 %v1079_v38  ;;  %1184 = vmatpush1.bf16.msra.mxu1 %v1081_v40  ;;  %v1068_v56 = vadd.bf16 %v2069_v16, %v1044_v0  ;;  %v1070_v2 = vadd.bf16 %v2069_v16, %v1046_v22  ;;  %v1083_v12 = vmax.bf16 %v1747_v1, %v1067_v60  ;;  %v2117_v16 = vpop.permute.xlu1 %1345  ;;  %v2128_v38 = vpop.permute.xlu0 %1349 }
 0x33a   :  { %v979_v45 = vpop.f32.mrf.mxu0  ;;  %v1032_v47 = vpop.f32.mrf.mxu1  ;;  %v1085_v13 = vmax.bf16 %v1747_v1, %v1069_v8 }
 0x33b   :  { %v1084_v11 = vmax.bf16 %v1747_v1, %v1068_v56 }
 0x33c   :  { %v981_v21 = vpop.f32.mrf.mxu0  ;;  %1654 = vmatmul.mubr.msk.bf16.vlgmr.msra.gmra.mxu0 %vm238_vm0, %v1697_v41  ;;  %v1034_v27 = vpop.f32.mrf.mxu1  ;;  %1656 = vmatmul.mubr.msk.bf16.vlgmr.msra.gmra.mxu1 %vm238_vm0, %v1697_v41 }
 0x33d   :  { %v1051_v33 = vpack.c.bf16 %v981_v21, %v977_v39  ;;  %1158 = vmatprep.mubr.bf16.mxu0 %v1747_v1  ;;  %v1053_v48 = vpack.c.bf16 %v1034_v27, %v1030_v44  ;;  %1211 = vmatprep.mubr.bf16.mxu1 %v1747_v1  ;;  %v2119_v28 = vpop.permute.xlu1 %1417 }
 0x33e   :  { %v983_v49 = vpop.f32.mrf.mxu0  ;;  %v1036_v6 = vpop.f32.mrf.mxu1 }
 0x33f   :  { %v1052_v51 = vpack.c.bf16 %v983_v49, %v979_v45  ;;  %v1075_v7 = vadd.bf16 %v2067_v3, %v1051_v33  ;;  %v1054_v53 = vpack.c.bf16 %v1036_v6, %v1032_v47  ;;  %v1077_v46 = vadd.bf16 %v2067_v3, %v1053_v48 }
 0x341   :  { %v1076_v57 = vadd.bf16 %v2067_v3, %v1052_v51  ;;  %v1078_v58 = vadd.bf16 %v2067_v3, %v1054_v53  ;;  %v1091_v61 = vmax.bf16 %v1747_v1, %v1075_v7  ;;  %v1093_v4 = vmax.bf16 %v1747_v1, %v1077_v46  ;;  %v2131_v45 = vpop.permute.xlu1 %1421 }
 0x342   :  { %v1086_v3 = vmax.bf16 %v1747_v1, %v1070_v2 }
 0x343   :  { %v1092_v5 = vmax.bf16 %v1747_v1, %v1076_v57  ;;  %v1094_v63 = vmax.bf16 %v1747_v1, %v1078_v58 }
 0x344   :  { %1655 = vmatmul.mubr.msk.bf16.gmra.mxu0 %vm238_vm0, %v1698_v54  ;;  %1657 = vmatmul.mubr.msk.bf16.gmra.mxu1 %vm238_vm0, %v1698_v54 }
 0x345   :  { %1234 = vmatprep.subr.bf16.mxu0 %v1092_v5  ;;  %1287 = vmatprep.subr.bf16.mxu1 %v1094_v63 }
 0x346   :  { %1235 = vmatpush1.bf16.msra.mxu0 %v1091_v61  ;;  %1288 = vmatpush1.bf16.msra.mxu1 %v1093_v4 }
 0x347   :  { %1236 = vmatprep.subr.bf16.mxu0 %v1084_v11  ;;  %1289 = vmatprep.subr.bf16.mxu1 %v1086_v3  ;;  %v2146_v3 = vpop.permute.xlu0 %1425 }
 0x348   :  { %1254 = vmatprep.mubr.bf16.mxu0 %v1747_v1  ;;  %1307 = vmatprep.mubr.bf16.mxu1 %v1747_v1 }
 0x34a   :  { %1237 = vmatpush1.bf16.msra.mxu0 %v1083_v12  ;;  %1290 = vmatpush1.bf16.msra.mxu1 %v1085_v13 }
 0x34d   :  { %1658 = vmatmul.mubr.msk.bf16.vlgmr.msra.gmra.mxu0 %vm238_vm0, %v1697_v41  ;;  %1660 = vmatmul.mubr.msk.bf16.vlgmr.msra.gmra.mxu1 %vm238_vm0, %v1697_v41 }
 0x34e   :  { %1264 = vmatprep.mubr.bf16.mxu0 %v1747_v1  ;;  %1317 = vmatprep.mubr.bf16.mxu1 %v1747_v1 }
 0x355   :  { %1659 = vmatmul.mubr.msk.bf16.gmra.mxu0 %vm238_vm0, %v1698_v54  ;;  %1661 = vmatmul.mubr.msk.bf16.gmra.mxu1 %vm238_vm0, %v1698_v54 }
 0x3fc   :  { %v1150_v15 = vpop.f32.mrf.mxu0  ;;  %v1203_v17 = vpop.f32.mrf.mxu1 }
 0x3fe   :  { %v1152_v43 = vpop.f32.mrf.mxu0  ;;  %v1205_v9 = vpop.f32.mrf.mxu1 }
 0x400   :  { %v1154_v62 = vpop.f32.mrf.mxu0  ;;  %v1207_v18 = vpop.f32.mrf.mxu1 }
 0x401   :  { %v1328_v14 = vpack.c.bf16 %v1154_v62, %v1150_v15  ;;  %v1330_v42 = vpack.c.bf16 %v1207_v18, %v1203_v17 }
 0x402   :  { %v1156_v19 = vpop.f32.mrf.mxu0  ;;  %v1209_v29 = vpop.f32.mrf.mxu1 }
 0x403   :  { %v1329_v24 = vpack.c.bf16 %v1156_v19, %v1152_v43  ;;  %v1352_v50 = vadd.bf16 %v2117_v16, %v1328_v14  ;;  %v1331_v30 = vpack.c.bf16 %v1209_v29, %v1205_v9  ;;  %v1354_v31 = vadd.bf16 %v2117_v16, %v1330_v42 }
 0x404   :  { %v1160_v25 = vpop.f32.mrf.mxu0  ;;  %v1213_v32 = vpop.f32.mrf.mxu1 }
 0x405   :  { %v1353_v20 = vadd.bf16 %v2117_v16, %v1329_v24  ;;  %v1368_v34 = vmax.bf16 %v1747_v1, %v1352_v50  ;;  %v1355_v35 = vadd.bf16 %v2117_v16, %v1331_v30  ;;  %v1370_v36 = vmax.bf16 %v1747_v1, %v1354_v31  ;;  %v2152_v31 = vpop.permute.xlu1 %1429 }
 0x406   :  { %v1162_v26 = vpop.f32.mrf.mxu0  ;;  %v1215_v23 = vpop.f32.mrf.mxu1 }
 0x407   :  { %v1369_v59 = vmax.bf16 %v1747_v1, %v1353_v20  ;;  %v1384_v37 = vunpack.c.l.bf16 %v1368_v34  ;;  %v1392_v39 = vunpack.c.h.bf16 %v1368_v34  ;;  %v1371_v40 = vmax.bf16 %v1747_v1, %v1355_v35 }
 0x408   :  { %v1164_v41 = vpop.f32.mrf.mxu0  ;;  %v1386_v44 = vunpack.c.l.bf16 %v1370_v36  ;;  %v1217_v21 = vpop.f32.mrf.mxu1  ;;  %v1394_v27 = vunpack.c.h.bf16 %v1370_v36 }
 0x409   :  { %v1336_v47 = vpack.c.bf16 %v1164_v41, %v1160_v25  ;;  %v1385_v0 = vunpack.c.l.bf16 %v1369_v59  ;;  %v1393_v33 = vunpack.c.h.bf16 %v1369_v59  ;;  %v1338_v22 = vpack.c.bf16 %v1217_v21, %v1213_v32 }
 0x40a   :  { %v1387_v48 = vunpack.c.l.bf16 %v1371_v40  ;;  %v1432_v49 = vmul.f32 %v2119_v28, %v1384_v37  ;;  %v1166_v51 = vpop.f32.mrf.mxu0  ;;  %v1395_v6 = vunpack.c.h.bf16 %v1371_v40  ;;  %v1219_v54 = vpop.f32.mrf.mxu1  ;;  %v1440_v55 = vmul.f32 %v2131_v45, %v1392_v39 }
 0x40b   :  { %v1433_v52 = vmul.f32 %v2119_v28, %v1385_v0  ;;  %v1360_v7 = vadd.bf16 %v2128_v38, %v1336_v47  ;;  %v1337_v53 = vpack.c.bf16 %v1166_v51, %v1162_v26  ;;  %v1434_v56 = vmul.f32 %v2119_v28, %v1386_v44 }
 0x40c   :  { %v1362_v46 = vadd.bf16 %v2128_v38, %v1338_v22  ;;  %v1339_v57 = vpack.c.bf16 %v1219_v54, %v1215_v23  ;;  %v1441_v2 = vmul.f32 %v2131_v45, %v1393_v33  ;;  %v1442_v60 = vmul.f32 %v2131_v45, %v1394_v27 }
 0x40d   :  { %v1361_v58 = vadd.bf16 %v2128_v38, %v1337_v53  ;;  %v1256_v5 = vpop.f32.mrf.mxu0  ;;  %v1376_v61 = vmax.bf16 %v1747_v1, %v1360_v7  ;;  %v1435_v63 = vmul.f32 %v2119_v28, %v1387_v48  ;;  %v1309_v4 = vpop.f32.mrf.mxu1  ;;  %v1443_v11 = vmul.f32 %v2131_v45, %v1395_v6 }
 0x40e   :  { %v1363_v8 = vadd.bf16 %v2128_v38, %v1339_v57  ;;  %v1378_v12 = vmax.bf16 %v1747_v1, %v1362_v46  ;;  %v1464_v43 = vadd.f32 %v1440_v55, %v1432_v49  ;;  %v1473_v9 = vadd.f32 %v1441_v2, %v1433_v52 }
 0x40f   :  { %v1377_v13 = vmax.bf16 %v1747_v1, %v1361_v58  ;;  %v1258_v15 = vpop.f32.mrf.mxu0  ;;  %v1400_v17 = vunpack.c.l.bf16 %v1376_v61  ;;  %v1311_v14 = vpop.f32.mrf.mxu1  ;;  %v1408_v42 = vunpack.c.h.bf16 %v1376_v61  ;;  %v1482_v19 = vadd.f32 %v1442_v60, %v1434_v56 }
 0x410   :  { %v1379_v62 = vmax.bf16 %v1747_v1, %v1363_v8  ;;  %v1402_v18 = vunpack.c.l.bf16 %v1378_v12  ;;  %v1410_v50 = vunpack.c.h.bf16 %v1378_v12  ;;  %v1491_v34 = vadd.f32 %v1443_v11, %v1435_v63 }
 0x411   :  { %v1401_v24 = vunpack.c.l.bf16 %v1377_v13  ;;  %v1409_v29 = vunpack.c.h.bf16 %v1377_v13  ;;  %v1448_v30 = vmul.f32 %v2146_v3, %v1400_v17  ;;  %v1260_v25 = vpop.f32.mrf.mxu0  ;;  %v1313_v36 = vpop.f32.mrf.mxu1  ;;  %v1456_v44 = vmul.f32 %v2152_v31, %v1408_v42 }
 0x412   :  { %v1403_v32 = vunpack.c.l.bf16 %v1379_v62  ;;  %v1450_v20 = vmul.f32 %v2146_v3, %v1402_v18  ;;  %v1332_v35 = vpack.c.bf16 %v1260_v25, %v1256_v5  ;;  %v1411_v26 = vunpack.c.h.bf16 %v1379_v62 }
 0x413   :  { %v1449_v59 = vmul.f32 %v2146_v3, %v1401_v24  ;;  %v1465_v23 = vadd.f32 %v1464_v43, %v1448_v30  ;;  %v1334_v37 = vpack.c.bf16 %v1313_v36, %v1309_v4  ;;  %v1262_v39 = vpop.f32.mrf.mxu0  ;;  %v1457_v47 = vmul.f32 %v2152_v31, %v1409_v29  ;;  %v1315_v21 = vpop.f32.mrf.mxu1 }
 0x414   :  { %v1451_v40 = vmul.f32 %v2146_v3, %v1403_v32  ;;  %v1356_v41 = vadd.bf16 %v2117_v16, %v1332_v35  ;;  %v1483_v33 = vadd.f32 %v1482_v19, %v1450_v20  ;;  %v1333_v22 = vpack.c.bf16 %v1262_v39, %v1258_v15 }
 0x415   :  { %v1474_v0 = vadd.f32 %v1473_v9, %v1449_v59  ;;  %v1358_v27 = vadd.bf16 %v2117_v16, %v1334_v37  ;;  %v1266_v48 = vpop.f32.mrf.mxu0  ;;  %v1458_v51 = vmul.f32 %v2152_v31, %v1410_v50  ;;  %v1335_v6 = vpack.c.bf16 %v1315_v21, %v1311_v14  ;;  %v1319_v52 = vpop.f32.mrf.mxu1 }
 0x416   :  { %v1372_v49 = vmax.bf16 %v1747_v1, %v1356_v41  ;;  %v1466_v7 = vadd.f32 %v1465_v23, %v1456_v44  ;;  %v2163_v53 = vadd.f32 %v1491_v34, %v1451_v40  ;;  %v2167_v55 = vmul.f32 %v2152_v31, %v1411_v26 }
 0x417   :  { %v1374_v54 = vmax.bf16 %v1747_v1, %v1358_v27  ;;  %v1357_v56 = vadd.bf16 %v2117_v16, %v1333_v22  ;;  %v1268_v46 = vpop.f32.mrf.mxu0  ;;  %v1359_v58 = vadd.bf16 %v2117_v16, %v1335_v6  ;;  %v1321_v5 = vpop.f32.mrf.mxu1  ;;  %v1475_v60 = vadd.f32 %v1474_v0, %v1457_v47 }
 0x418   :  { %v1388_v57 = vunpack.c.l.bf16 %v1372_v49  ;;  %v1396_v2 = vunpack.c.h.bf16 %v1372_v49  ;;  %v1467_v11 = vrot.slane %v1466_v7, 4  ;;  %v1484_v50 = vadd.f32 %v1483_v33, %v1458_v51 }
 0x419   :  { %v1390_v61 = vunpack.c.l.bf16 %v1374_v54  ;;  %v1398_v63 = vunpack.c.h.bf16 %v1374_v54  ;;  %v1373_v8 = vmax.bf16 %v1747_v1, %v1357_v56  ;;  %v1270_v4 = vpop.f32.mrf.mxu0  ;;  %v1375_v15 = vmax.bf16 %v1747_v1, %v1359_v58  ;;  %v1323_v43 = vpop.f32.mrf.mxu1 }
 0x41a   :  { %v1436_v12 = vmul.f32 %v2119_v28, %v1388_v57  ;;  %v1444_v13 = vmul.f32 %v2131_v45, %v1396_v2  ;;  %v1340_v17 = vpack.c.bf16 %v1270_v4, %v1266_v48  ;;  %v1342_v32 = vpack.c.bf16 %v1323_v43, %v1319_v52 }
 0x41b   :  { %v1438_v9 = vmul.f32 %v2119_v28, %v1390_v61  ;;  %v1446_v16 = vmul.f32 %v2131_v45, %v1398_v63  ;;  %v1389_v62 = vunpack.c.l.bf16 %v1373_v8  ;;  %v1397_v14 = vunpack.c.h.bf16 %v1373_v8  ;;  %v1272_v18 = vpop.f32.mrf.mxu0  ;;  %v1325_v29 = vpop.f32.mrf.mxu1 }
 0x41c   :  { %v1391_v42 = vunpack.c.l.bf16 %v1375_v15  ;;  %v1399_v19 = vunpack.c.h.bf16 %v1375_v15  ;;  %v1364_v24 = vadd.bf16 %v2128_v38, %v1340_v17  ;;  %v1476_v20 = vrot.slane %v1475_v60, 4 }
 0x41d   :  { %v1437_v30 = vmul.f32 %v2119_v28, %v1389_v62  ;;  %v1445_v25 = vmul.f32 %v2131_v45, %v1397_v14  ;;  %v1500_v34 = vadd.f32 %v1444_v13, %v1436_v12  ;;  %v1518_v35 = vadd.f32 %v1446_v16, %v1438_v9 }
 0x41e   :  { %v1380_v36 = vmax.bf16 %v1747_v1, %v1364_v24  ;;  %v1341_v26 = vpack.c.bf16 %v1272_v18, %v1268_v46  ;;  %v1439_v59 = vmul.f32 %v2119_v28, %v1391_v42  ;;  %v1366_v23 = vadd.bf16 %v2128_v38, %v1342_v32 }
 0x41f   :  { %v1343_v37 = vpack.c.bf16 %v1325_v29, %v1321_v5  ;;  %v1468_v39 = vadd.f32 %v1467_v11, %v1466_v7  ;;  %v1447_v40 = vmul.f32 %v2131_v45, %v1399_v19  ;;  %v1509_v21 = vadd.f32 %v1445_v25, %v1437_v30 }
 0x420   :  { %v1404_v41 = vunpack.c.l.bf16 %v1380_v36  ;;  %v1412_v44 = vunpack.c.h.bf16 %v1380_v36  ;;  %v1365_v47 = vadd.bf16 %v2128_v38, %v1341_v26  ;;  %v1382_v0 = vmax.bf16 %v1747_v1, %v1366_v23 }
 0x421   :  { %v1367_v33 = vadd.bf16 %v2128_v38, %v1343_v37  ;;  %v1477_v27 = vadd.f32 %v1476_v20, %v1475_v60  ;;  %v1469_v49 = vrot.slane %v1468_v39, 2  ;;  %v1485_v52 = vrot.slane %v1484_v50, 4  ;;  %v1538_v37 = vpop.permute.xlu1 %1537 }
 0x422   :  { %v1452_v22 = vmul.f32 %v2146_v3, %v1404_v41  ;;  %v1460_v28 = vmul.f32 %v2152_v31, %v1412_v44  ;;  %v1381_v48 = vmax.bf16 %v1747_v1, %v1365_v47  ;;  %v1406_v51 = vunpack.c.l.bf16 %v1382_v0 }
 0x423   :  { %v1414_v6 = vunpack.c.h.bf16 %v1382_v0  ;;  %v1383_v45 = vmax.bf16 %v1747_v1, %v1367_v33  ;;  %v1478_v46 = vrot.slane %v1477_v27, 2  ;;  %v1527_v57 = vadd.f32 %v1447_v40, %v1439_v59 }
 0x424   :  { %v1501_v7 = vadd.f32 %v1500_v34, %v1452_v22  ;;  %v1405_v54 = vunpack.c.l.bf16 %v1381_v48  ;;  %v1413_v56 = vunpack.c.h.bf16 %v1381_v48  ;;  %v1454_v38 = vmul.f32 %v2146_v3, %v1406_v51 }
 0x425   :  { %v1407_v2 = vunpack.c.l.bf16 %v1383_v45  ;;  %v1415_v58 = vunpack.c.h.bf16 %v1383_v45  ;;  %v1462_v60 = vmul.f32 %v2152_v31, %v1414_v6  ;;  %v1470_v63 = vadd.f32 %v1469_v49, %v1468_v39 }
 0x426   :  { %v1502_v5 = vadd.f32 %v1501_v7, %v1460_v28  ;;  %v1453_v61 = vmul.f32 %v2146_v3, %v1405_v54  ;;  %v1519_v8 = vadd.f32 %v1518_v35, %v1454_v38  ;;  %v1461_v4 = vmul.f32 %v2152_v31, %v1413_v56 }
 0x427   :  { %v1455_v1 = vmul.f32 %v2146_v3, %v1407_v2  ;;  %v1479_v11 = vadd.f32 %v1478_v46, %v1477_v27  ;;  %v1463_v15 = vmul.f32 %v2152_v31, %v1415_v58  ;;  %v1486_v17 = vadd.f32 %v1485_v52, %v1484_v50 }
 0x428   :  { %v1503_v12 = vrot.slane %v1502_v5, 4  ;;  %v1510_v13 = vadd.f32 %v1509_v21, %v1453_v61  ;;  %v1520_v43 = vadd.f32 %v1519_v8, %v1462_v60  ;;  %v1493_v62 = vadd.f32 %v2163_v53, %v2167_v55 }
 0x429   :  { %v1528_v9 = vadd.f32 %v1527_v57, %v1455_v1  ;;  %v1480_v16 = vrot.slane %v1479_v11, 1  ;;  %v1471_v42 = vrot.slane %v1470_v63, 1  ;;  %v1487_v19 = vrot.slane %v1486_v17, 2 }
 0x42a   :  { %v1504_v14 = vadd.f32 %v1503_v12, %v1502_v5  ;;  %v1511_v18 = vadd.f32 %v1510_v13, %v1461_v4  ;;  %v1521_v24 = vrot.slane %v1520_v43, 4  ;;  %v1494_v30 = vrot.slane %v1493_v62, 4 }
 0x42b   :  { %v1529_v29 = vadd.f32 %v1528_v9, %v1463_v15  ;;  %v1488_v32 = vadd.f32 %v1487_v19, %v1486_v17  ;;  %v1754_v20 = vmov 1966171168   ;;  %v1481_v35 = vadd.f32 %v1480_v16, %v1479_v11 }
 0x42c   :  { %v1505_v3 = vrot.slane %v1504_v14, 2  ;;  %v1512_v25 = vrot.slane %v1511_v18, 4  ;;  %v1561_v34 = vunpack.c.l.s4 %v1754_v20  ;;  %v1522_v31 = vadd.f32 %v1521_v24, %v1520_v43 }
 0x42d   :  { %v1530_v50 = vrot.slane %v1529_v29, 4  ;;  %v1495_v36 = vadd.f32 %v1494_v30, %v1493_v62  ;;  %v1472_v23 = vadd.f32 %v1471_v42, %v1470_v63  ;;  %v1489_v39 = vrot.slane %v1488_v32, 1 }
 0x42e   :  { %v1506_v26 = vadd.f32 %v1505_v3, %v1504_v14  ;;  %v1513_v59 = vadd.f32 %v1512_v25, %v1511_v18  ;;  %v1523_v53 = vrot.slane %v1522_v31, 2  ;;  %v1562_v47 = vunpack.c.0.s8 %v1561_v34 }
 0x42f   :  { %v1531_v55 = vadd.f32 %v1530_v50, %v1529_v29  ;;  %v1496_v40 = vrot.slane %v1495_v36, 2  ;;  %v1541_v27 = vadd.f32 %v1538_v37, %v1481_v35  ;;  %v1540_v28 = vadd.f32 %v1538_v37, %v1472_v23 }
 0x430   :  { %v1507_v41 = vrot.slane %v1506_v26, 1  ;;  %v1514_v44 = vrot.slane %v1513_v59, 2  ;;  %v1524_v21 = vadd.f32 %v1523_v53, %v1522_v31  ;;  %v1490_v51 = vadd.f32 %v1489_v39, %v1488_v32 }
 0x431   :  { %v1532_v0 = vrot.slane %v1531_v55, 2  ;;  %v1497_v33 = vadd.f32 %v1496_v40, %v1495_v36  ;;  %v1565_v7 = vsub.s32 %v1562_v47, %v1821_v10  ;;  %v1556_v57 = vcombine.low %v1540_v28, %v1541_v27 }
 0x432   :  { %v1515_v22 = vadd.f32 %v1514_v44, %v1513_v59  ;;  %v1525_v48 = vrot.slane %v1524_v21, 1  ;;  %v1508_v52 = vadd.f32 %v1507_v41, %v1506_v26  ;;  %v1542_v58 = vadd.f32 %v1538_v37, %v1490_v51 }
 0x433   :  { %v1533_v49 = vadd.f32 %v1532_v0, %v1531_v55  ;;  %v1498_v6 = vrot.slane %v1497_v33, 1  ;;  %v1566_v1 = vrot.slane %v1556_v57, %v1565_v7 }
 0x434   :  { %v1516_v45 = vrot.slane %v1515_v22, 1  ;;  %v1526_v46 = vadd.f32 %v1525_v48, %v1524_v21  ;;  %v1544_v60 = vadd.f32 %v1538_v37, %v1508_v52 }
 0x435   :  { %v1534_v54 = vrot.slane %v1533_v49, 1  ;;  %v1499_v56 = vadd.f32 %v1498_v6, %v1497_v33 }
 0x436   :  { %v1517_v38 = vadd.f32 %v1516_v45, %v1515_v22  ;;  %v1546_v63 = vadd.f32 %v1538_v37, %v1526_v46 }
 0x437   :  { %v1535_v2 = vadd.f32 %v1534_v54, %v1533_v49  ;;  %v1543_v5 = vadd.f32 %v1538_v37, %v1499_v56 }
 0x438   :  { %v1545_v61 = vadd.f32 %v1538_v37, %v1517_v38 }
 0x439   :  { %v1547_v8 = vadd.f32 %v1538_v37, %v1535_v2  ;;  %v1557_v4 = vcombine.low %v1542_v58, %v1543_v5 }
 0x43a   :  { %v1558_v11 = vcombine.low %v1544_v60, %v1545_v61 }
 0x43b   :  { %v1559_v12 = vcombine.low %v1546_v63, %v1547_v8  ;;  %v1573_v13 = vrot.slane %v1557_v4, %v1565_v7 }
 0x43c   :  { %v1580_v15 = vrot.slane %v1558_v11, %v1565_v7 }
 0x43d   :  { %v1587_v17 = vrot.slane %v1559_v12, %v1565_v7  ;;  %v1588_v10 = vcombine.low %v1566_v1, %v1573_v13 }
 0x43f   :  { %v1589_v43 = vcombine.low %v1580_v15, %v1587_v17  ;;  %v1596_v9 = vrot.slane %v1588_v10, %v1565_v7 }
 0x441   :  { %v1603_v16 = vrot.slane %v1589_v43, %v1565_v7 }
 0x443   :  { %v1604_v62 = vcombine.low %v1596_v9, %v1603_v16 }
 0x445   :  { %1606 = vst [vmem:[#allocation5] sm:$0xff] %v1604_v62 }
 0x446   :  { %1730 = shalt.err (!%p1727_p9)
}
 0x447   :  { %1616 = dma.vmem_to_hbm [thread:$0]  %s1614_s27, 128, %s2206_s3, [#allocation4]  }
 0x448   :  { %1741 = dma.done.wait [#allocation4], 128  }
 0x449   :  { %1742 = vsyncadd [#allocation4], 4294967168 }
 0x44a   :  { %1620 = vsyncpa [#allocation3], 1 }
 0x44b   :  { %1621 = vsyncpa [#allocation4], 1 }

</bundles_post_ra>
